<compile_context>
chip_gen: v6e
topology: v6e:2x2x1
jax: 0.10.0
libtpu: 0.0.40
codegen_flags: <defaults>
</compile_context>

<pallas_src>
import jax
import jax.numpy as jnp
from jax.experimental import pallas as pl
from jax.experimental.pallas import tpu as pltpu


def _round_up(x, m):
    return ((x + m - 1) // m) * m


def _tree_fold(chunks):
    """Pairwise-add a list of equal-shaped arrays (shallow dependency tree)."""
    while len(chunks) > 1:
        nxt = [a + b for a, b in zip(chunks[0::2], chunks[1::2])]
        if len(chunks) % 2:
            nxt.append(chunks[-1])
        chunks = nxt
    return chunks[0]


def _supcon_neg_kernel(pos_ref, neg_ref, out_ref):
    """One tile of negatives -> one (8, 128) partial-sum slab.

    pos_ref: (1, Fp)      resident positive row (broadcast over sublanes)
    neg_ref: (TN, Fp)     tile of negatives
    out_ref: (1, 8, 128)  this tile's partial sums (lane-dense store)
    """
    tn, fp = neg_ref.shape
    pos = pos_ref[...].astype(jnp.float32)        # (1, Fp)
    neg = neg_ref[...].astype(jnp.float32)        # (TN, Fp)
    diff = jnp.abs(neg - pos)                     # (TN, Fp), VPU only

    # Fold lanes: add 128-wide chunks.  Static slices at 128-lane boundaries
    # are free views; the adds are VALU work (tree for better ILP).
    lane_chunks = [diff[:, j * 128:(j + 1) * 128] for j in range(fp // 128)]
    lane_sum = _tree_fold(lane_chunks)            # (TN, 128)

    # Fold sublanes: add 8-row chunks down to one vreg-shaped slab.
    row_chunks = [lane_sum[r * 8:(r + 1) * 8, :] for r in range(tn // 8)]
    slab = _tree_fold(row_chunks)                 # (8, 128)

    out_ref[0] = slab


def supcon_loss_forward(anchor_audio, positive_video, negative_audio):
    """Pallas implementation of SupConLoss.forward."""
    B, D = anchor_audio.shape
    N = negative_audio.shape[0]

    # Positive distance: one-shot tiny reduction, no reason to put it in the
    # N-negatives loop.
    dist_positive = jnp.sum(
        jnp.abs(anchor_audio.astype(jnp.float32) -
                positive_video.astype(jnp.float32))) / B

    # ---- lane-dense flatten + padding (wrapper-side plumbing only) ----
    F = B * D
    Fp = _round_up(F, 128)
    pos2d = positive_video.reshape(1, F)
    neg2d = negative_audio.reshape(N, F)
    if Fp != F:
        pad = Fp - F
        pos2d = jnp.pad(pos2d, ((0, 0), (0, pad)))   # zeros on both sides
        neg2d = jnp.pad(neg2d, ((0, 0), (0, pad)))   # -> |0 - 0| = 0

    # ---- tile the negatives axis ----
    itemsize = jnp.dtype(neg2d.dtype).itemsize
    row_bytes = Fp * itemsize
    # Keep the double-buffered negatives tile <= ~8 MiB so the kernel fits
    # comfortably inside every generation's scoped VMEM (v5e default 16 MiB,
    # v7x 64 MiB physical) with headroom for the resident positive + outputs.
    vmem_budget = 8 * 1024 * 1024
    tn_cap = max(8, ((vmem_budget // (2 * row_bytes)) // 8) * 8)
    TN = int(min(tn_cap, 512, _round_up(N, 8)))
    Np = _round_up(N, TN)
    if Np != N:
        # Pad with copies of the positive row: |p - p| = 0 contribution.
        pad_rows = jnp.broadcast_to(pos2d, (Np - N, Fp)).astype(neg2d.dtype)
        neg2d = jnp.concatenate([neg2d, pad_rows], axis=0)
    num_tiles = Np // TN

    partials = pl.pallas_call(
        _supcon_neg_kernel,
        out_shape=jax.ShapeDtypeStruct((num_tiles, 8, 128), jnp.float32),
        grid_spec=pltpu.PrefetchScalarGridSpec(
            num_scalar_prefetch=0,
            grid=(num_tiles,),
            in_specs=[
                pl.BlockSpec((1, Fp), lambda i: (0, 0)),    # positive (resident)
                pl.BlockSpec((TN, Fp), lambda i: (i, 0)),   # negatives tile
            ],
            out_specs=pl.BlockSpec((1, 8, 128), lambda i: (i, 0, 0)),
        ),
        compiler_params=pltpu.CompilerParams(
            dimension_semantics=("parallel",),   # no cross-step carry -> megacore OK
            vmem_limit_bytes=32 * 1024 * 1024,
        ),
    )(pos2d, neg2d)

    # Final cross-lane / cross-tile reduce, once, outside the hot loop.
    neg_sum = jnp.sum(partials)
    dist_negative = (neg_sum / B) / N
    return dist_positive - dist_negative


def _reference(anchor_audio, positive_video, negative_audio):
    B = anchor_audio.shape[0]
    N = negative_audio.shape[0]
    dist_positive = jnp.sum(jnp.abs(anchor_audio - positive_video)) / B
    s = 0.0
    for i in range(N):
        s = s + jnp.sum(jnp.abs(positive_video - negative_audio[i])) / B
    dist_negative = s / N
    return dist_positive - dist_negative


if __name__ == "__main__":
    B, D, N = 8, 32, 4  # batch, feature dim, number of negatives
    key = jax.random.PRNGKey(0)
    k1, k2, k3 = jax.random.split(key, 3)
    anchor_audio = jax.random.normal(k1, (B, D), dtype=jnp.float32)
    positive_video = jax.random.normal(k2, (B, D), dtype=jnp.float32)
    negative_audio = jax.random.normal(k3, (N, B, D), dtype=jnp.float32)

    out = supcon_loss_forward(anchor_audio, positive_video, negative_audio)
    out = jax.block_until_ready(out)

    ref = _reference(anchor_audio, positive_video, negative_audio)
    assert jnp.allclose(out, ref, rtol=1e-5, atol=1e-5), (out, ref)

    # TODO(synk): lossBySimi is not exercised by forward() and is not implemented here.
    print("KERNEL_OK")
</pallas_src>

<mosaic_0001>
module attributes {stable_mosaic.version = 11 : i64} {
  func.func @_supcon_neg_kernel(%arg0: i32, %arg1: memref<1x256xf32, #tpu.memory_space<vmem>>, %arg2: memref<8x256xf32, #tpu.memory_space<vmem>>, %arg3: memref<1x8x128xf32, #tpu.memory_space<vmem>>) attributes {dimension_semantics = [#tpu.dimension_semantics<parallel>], iteration_bounds = array<i64: 1>, scalar_prefetch = 0 : i64, scratch_operands = 0 : i64, tpu.core_type = #tpu.core_type<tc>, window_params = [{pipeline_mode = #tpu.pipeline_mode<synchronous>, transform_indices = @transform_0, window_bounds = array<i64: 1, 256>}, {transform_indices = @transform_1, window_bounds = array<i64: 8, 256>}, {transform_indices = @transform_2, window_bounds = array<i64: 1, 8, 128>}]} {
    %c0 = arith.constant 0 : index
    %c0_0 = arith.constant 0 : index
    %0 = vector.load %arg1[%c0, %c0_0] : memref<1x256xf32, #tpu.memory_space<vmem>>, vector<1x256xf32>
    %c0_1 = arith.constant 0 : index
    %c0_2 = arith.constant 0 : index
    %1 = vector.load %arg2[%c0_1, %c0_2] : memref<8x256xf32, #tpu.memory_space<vmem>>, vector<8x256xf32>
    %2 = vector.broadcast %0 : vector<1x256xf32> to vector<8x256xf32>
    %3 = arith.subf %1, %2 : vector<8x256xf32>
    %4 = math.absf %3 : vector<8x256xf32>
    %5 = vector.extract_strided_slice %4 {offsets = [0, 0], sizes = [8, 128], strides = [1, 1]} : vector<8x256xf32> to vector<8x128xf32>
    %6 = vector.extract_strided_slice %4 {offsets = [0, 128], sizes = [8, 128], strides = [1, 1]} : vector<8x256xf32> to vector<8x128xf32>
    %7 = arith.addf %5, %6 : vector<8x128xf32>
    %c0_3 = arith.constant 0 : index
    %c0_4 = arith.constant 0 : index
    %c0_5 = arith.constant 0 : index
    %8 = vector.load %arg3[%c0_3, %c0_4, %c0_5] : memref<1x8x128xf32, #tpu.memory_space<vmem>>, vector<1x8x128xf32>
    %9 = vector.shape_cast %8 : vector<1x8x128xf32> to vector<8x128xf32>
    %10 = vector.shape_cast %7 : vector<8x128xf32> to vector<1x8x128xf32>
    tpu.vector_store %arg3[%c0_3, %c0_4, %c0_5], %10 {strides = array<i32>} : memref<1x8x128xf32, #tpu.memory_space<vmem>>, vector<1x8x128xf32>,
    return
  }
  func.func @transform_0(%arg0: i32) -> (i32, i32) {
    %c0_i32 = arith.constant 0 : i32
    %c0_i32_0 = arith.constant 0 : i32
    %c0_i32_1 = arith.constant 0 : i32
    return %c0_i32, %c0_i32_0 : i32, i32
  }
  func.func @transform_1(%arg0: i32) -> (i32, i32) {
    %c0_i32 = arith.constant 0 : i32
    %c0_i32_0 = arith.constant 0 : i32
    return %arg0, %c0_i32 : i32, i32
  }
  func.func @transform_2(%arg0: i32) -> (i32, i32, i32) {
    %c0_i32 = arith.constant 0 : i32
    %c0_i32_0 = arith.constant 0 : i32
    %c0_i32_1 = arith.constant 0 : i32
    return %arg0, %c0_i32, %c0_i32_0 : i32, i32, i32
  }
}

</mosaic_0001>

<bundles_post_ra>
// kernel: tpu_custom_call.1
= control target key start
LH: loop header
LB: loop body
LE: loop exit
PB: predicated region body
PF: predicated region fallthrough
CT: control target
= control target key end

     0   :  { %7 = vsyncpa [#allocation3], 0  ;;  %s168_s0 = inlined_call_operand.hbm [shape: f32[1,256], index: 0, kind: input, shape index: {}]   ;;  %s169_s1 = inlined_call_operand.hbm [shape: f32[8,256], index: 1, kind: input, shape index: {}]   ;;  %s170_s2 = inlined_call_operand.hbm [shape: f32[1,8,128], index: 2, kind: output, shape index: {}]  }
   0x1   :  { %8 = vsyncpa [#allocation6], 0 }
   0x2   :  { %9 = vsyncpa [#allocation4], 0  ;;  %s141_s9 = smov [#allocation2]   ;;  %s142_s11 = smov [#allocation5]  }
   0x3   :  { %s16_s10 = sshll.u32 %s141_s9, 4  ;;  %s26_s12 = sshll.u32 %s142_s11, 4  ;;  %s17_s10 = int_to_ptr.vmem [resolvable:$true] %s16_s10  ;;  %s27_s12 = int_to_ptr.vmem [resolvable:$true] %s26_s12 }
   0x4   :  { %s83_s13 = scalar_lea.vmem %s17_s10, 32  ;;  %p88_p1 = scmp.lt.s32.totalorder %s17_s10, %s17_s10 }
   0x5   :  { %p84_p0 = scmp.ne.s32.totalorder %s17_s10, %s83_s13  ;;  %p89_p2 = scmp.lt.s32.totalorder %s83_s13, %s83_s13 }
   0x7   :  { %p90_p3 = por %p89_p2, %p88_p1 }
   0x9   :  { %p91_p4 = pnand %p90_p3, %p84_p0 }
   0xb   :  { %94 = shalt.err (!%p91_p4)
}
   0xc   :  { %19 = dma.hbm_to_vmem [thread:$0]  %s168_s0, 32, %s17_s10, [#allocation3]  }
   0xd   :  { %s103_s16 = scalar_lea.vmem %s27_s12, 256  ;;  %p108_p6 = scmp.lt.s32.totalorder %s27_s12, %s27_s12 }
   0xe   :  { %p104_p5 = scmp.ne.s32.totalorder %s27_s12, %s103_s16  ;;  %p109_p7 = scmp.lt.s32.totalorder %s103_s16, %s103_s16 }
  0x10   :  { %p110_p8 = por %p109_p7, %p108_p6 }
  0x12   :  { %p111_p9 = pnand %p110_p8, %p104_p5 }
  0x14   :  { %114 = shalt.err (!%p111_p9)
}
  0x15   :  { %29 = dma.hbm_to_vmem [thread:$0]  %s169_s1, 256, %s27_s12, [#allocation6]  }
  0x16   :  { %135 = dma.done.wait [#allocation3], 32  }
  0x17   :  { %136 = vsyncadd [#allocation3], 4294967264 }
  0x18   :  { %137 = dma.done.wait [#allocation6], 256  }
  0x19   :  { %138 = vsyncadd [#allocation6], 4294967040  ;;  %v40_v0 = vlaneseq  ;;  %v36_v4 = vld [vmem:[#allocation2] sm:$0x3]  ;;  %v37_v5 = vld [vmem:[#allocation5] sm:$0xff]  ;;  %s143_s0 = smov [#allocation7]  }
  0x1a   :  { %v38_v6 = vld [vmem:[#allocation5 + $0x8] sm:$0xff]  ;;  %s62_s19 = sshll.u32 %s143_s0, 4  ;;  %s63_s19 = int_to_ptr.vmem [resolvable:$true] %s62_s19 }
  0x1b   :  { %v41_v1 = vshrl.u32 %v40_v0, 7  ;;  %s115_s1 = scalar_lea.vmem %s63_s19, 128  ;;  %p120_p11 = scmp.lt.s32.totalorder %s63_s19, %s63_s19 }
  0x1c   :  { %p116_p10 = scmp.ne.s32.totalorder %s63_s19, %s115_s1  ;;  %p121_p12 = scmp.lt.s32.totalorder %s115_s1, %s115_s1 }
  0x1d   :  { %v42_v2 = vsub.s32 0, %v41_v1  ;;  %v46_v3 = vsub.s32 1, %v41_v1 }
  0x1e   :  { %p122_p13 = por %p121_p12, %p120_p11 }
  0x1f   :  { %v43_v7 = vrot.slane %v36_v4, %v42_v2  ;;  %v47_v8 = vrot.slane %v36_v4, %v46_v3 }
  0x20   :  { %p123_p0 = pnand %p122_p13, %p116_p10 }
  0x21   :  { %v50_v9 = vsub.f32 %v37_v5, %v43_v7  ;;  %v51_v10 = vsub.f32 %v38_v6, %v47_v8 }
  0x23   :  { %v52_v11 = vand.u32 2147483647, %v50_v9  ;;  %v53_v12 = vand.u32 2147483647, %v51_v10 }
  0x25   :  { %v54_v13 = vadd.f32 %v53_v12, %v52_v11 }
  0x27   :  { %55 = vst [vmem:[#allocation7] sm:$0xff] %v54_v13 }
  0x28   :  { %126 = shalt.err (!%p123_p0)
}
  0x29   :  { %65 = dma.vmem_to_hbm [thread:$0]  %s63_s19, 128, %s170_s2, [#allocation4]  }
  0x2a   :  { %139 = dma.done.wait [#allocation4], 128  }
  0x2b   :  { %140 = vsyncadd [#allocation4], 4294967168 }
  0x2c   :  { %69 = vsyncpa [#allocation3], 1 }
  0x2d   :  { %70 = vsyncpa [#allocation6], 1 }
  0x2e   :  { %71 = vsyncpa [#allocation4], 1 }

</bundles_post_ra>
